<compile_context>
chip_gen: v7x
topology: tpu7x:2x2x1
jax: 0.10.0
libtpu: 0.0.40
codegen_flags: <defaults>
</compile_context>

<pallas_src>
import jax
import jax.numpy as jnp
from jax.experimental import pallas as pl
from jax.experimental.pallas import tpu as pltpu


def _round_up(n, m):
    return (n + m - 1) // m * m


def linear_seq_attn_kernel(x_ref, w_ref, b_ref, mask_ref, out_ref):
    # x_ref    : (block_b, L, H)  native dtype (f32 / bf16 / ...)
    # w_ref    : (1, H)           f32   (constant index_map -> resident)
    # b_ref    : (1, 1)           f32   (SMEM scalar)
    # mask_ref : (block_b, L)     int32 (nonzero => masked out)
    # out_ref  : (block_b, L)     f32   softmax attention weights
    x = x_ref[...].astype(jnp.float32)      # upcast AFTER the (narrow) DMA
    w = w_ref[...].astype(jnp.float32)      # (1, H) broadcasts over (B, L, H)
    b = b_ref[0, 0]

    # scores_i = w . x_i + b  -> (block_b, L)
    scores = jnp.sum(x * w, axis=-1) + b

    # masked_fill_(x_mask, -inf)
    scores = jnp.where(mask_ref[...] != 0, -jnp.inf, scores)

    # Numerically-stable softmax over L (fully intra-block).
    # NOTE: a fully-masked row yields NaN, matching torch masked_fill+softmax.
    m = jnp.max(scores, axis=-1, keepdims=True)
    e = jnp.exp(scores - m)
    denom = jnp.sum(e, axis=-1, keepdims=True)
    out_ref[...] = (e / denom).astype(out_ref.dtype)


def linear_seq_attn(x, x_mask, weight, bias, *, block_b=None):
    """x: (B, L, H) float (any), x_mask: (B, L) bool/int, weight: (1, H), bias: (1,)."""
    B, L, H = x.shape
    itemsize = jnp.dtype(x.dtype).itemsize

    # Batch tile: multiple of 8 (sublane alignment for the (block_b, L)
    # mask/output blocks), sized so one x tile is <= ~4 MiB -> double-buffered
    # working set stays well inside v7x's 32 MiB scoped VMEM.
    if block_b is None:
        budget_bytes = 4 * 1024 * 1024
        rows = max(1, budget_bytes // max(1, L * H * itemsize))
        block_b = max(8, (rows // 8) * 8)
    block_b = max(8, _round_up(block_b, 8))
    block_b = min(block_b, _round_up(B, 8))

    # Pad the batch so every block is full; padded rows are unmasked zeros
    # (-> uniform softmax, no NaN) and are sliced off below.
    B_pad = _round_up(B, block_b)
    mask = x_mask.astype(jnp.int32)
    if B_pad != B:
        x = jnp.pad(x, ((0, B_pad - B), (0, 0), (0, 0)))
        mask = jnp.pad(mask, ((0, B_pad - B), (0, 0)))

    w2d = weight.reshape(1, H).astype(jnp.float32)
    b2d = bias.reshape(1, 1).astype(jnp.float32)

    grid = (B_pad // block_b,)
    out = pl.pallas_call(
        linear_seq_attn_kernel,
        out_shape=jax.ShapeDtypeStruct((B_pad, L), jnp.float32),
        grid=grid,
        in_specs=[
            # x: streamed per batch tile, native dtype on the wire.
            pl.BlockSpec((block_b, L, H), lambda i: (i, 0, 0)),
            # weight: constant index_map -> fetched once, stays resident.
            pl.BlockSpec((1, H), lambda i: (0, 0)),
            # bias: scalar in SMEM (no VMEM tile / per-step DMA burned on it).
            pl.BlockSpec(memory_space=pltpu.MemorySpace.SMEM),
            # mask: per batch tile.
            pl.BlockSpec((block_b, L), lambda i: (i, 0)),
        ],
        out_specs=pl.BlockSpec((block_b, L), lambda i: (i, 0)),
        compiler_params=pltpu.CompilerParams(
            # Batch axis is embarrassingly parallel -> v7x shards grid steps
            # across its 2 TensorCores; no-op on single-TC v5e/v6e.
            dimension_semantics=("parallel",),
        ),
    )(x, w2d, b2d, mask)

    return out[:B] if B_pad != B else out


def linear_seq_attn_ref(x, x_mask, weight, bias):
    """Pure-JAX reference mirroring the PyTorch forward (f32 compute)."""
    xf = x.astype(jnp.float32)
    scores = jnp.einsum("blh,h->bl", xf, weight.reshape(-1).astype(jnp.float32))
    scores = scores + bias.astype(jnp.float32)[0]
    scores = jnp.where(x_mask, -jnp.inf, scores)
    return jax.nn.softmax(scores, axis=-1)


if __name__ == "__main__":
    key = jax.random.PRNGKey(0)
    k_x, k_m, k_w, k_b, k_x2, k_m2 = jax.random.split(key, 6)

    B, L, H = 2, 8, 32
    x = jax.random.normal(k_x, (B, L, H), dtype=jnp.float32)

    # Random mask; keep position 0 of every row unmasked so softmax is
    # well-defined (at least one valid token per row).
    x_mask = jax.random.bernoulli(k_m, p=0.3, shape=(B, L))
    x_mask = x_mask.at[:, 0].set(False)

    # Deterministic nn.Linear(H, 1) parameters.
    bound = 1.0 / jnp.sqrt(H)
    weight = jax.random.uniform(k_w, (1, H), minval=-bound, maxval=bound,
                                dtype=jnp.float32)
    bias = jax.random.uniform(k_b, (1,), minval=-bound, maxval=bound,
                              dtype=jnp.float32)

    # --- f32 input path ---
    alpha = jax.block_until_ready(linear_seq_attn(x, x_mask, weight, bias))
    alpha_ref = linear_seq_attn_ref(x, x_mask, weight, bias)
    assert alpha.shape == (B, L)
    assert jnp.allclose(alpha, alpha_ref, atol=1e-5, rtol=1e-5)
    assert jnp.allclose(jnp.sum(alpha, axis=-1), jnp.ones((B,)), atol=1e-5)

    # --- bf16 input path (native-dtype DMA, f32 compute inside the kernel) ---
    x_bf16 = x.astype(jnp.bfloat16)
    alpha_bf = jax.block_until_ready(linear_seq_attn(x_bf16, x_mask, weight, bias))
    alpha_bf_ref = linear_seq_attn_ref(x_bf16.astype(jnp.float32), x_mask,
                                       weight, bias)
    assert jnp.allclose(alpha_bf, alpha_bf_ref, atol=1e-5, rtol=1e-5)

    # --- multi-block grid path (B > block_b, exercises the batch pipeline) ---
    B2 = 16
    x2 = jax.random.normal(k_x2, (B2, L, H), dtype=jnp.float32)
    m2 = jax.random.bernoulli(k_m2, p=0.3, shape=(B2, L))
    m2 = m2.at[:, 0].set(False)
    alpha2 = jax.block_until_ready(
        linear_seq_attn(x2, m2, weight, bias, block_b=8))
    alpha2_ref = linear_seq_attn_ref(x2, m2, weight, bias)
    assert alpha2.shape == (B2, L)
    assert jnp.allclose(alpha2, alpha2_ref, atol=1e-5, rtol=1e-5)

    print("KERNEL_OK")
</pallas_src>

<mosaic_0001>
module attributes {stable_mosaic.version = 11 : i64} {
  func.func @linear_seq_attn_kernel(%arg0: i32, %arg1: memref<8x8x32xf32, #tpu.memory_space<vmem>>, %arg2: memref<1x32xf32, #tpu.memory_space<vmem>>, %arg3: memref<1x1xf32, #tpu.memory_space<smem>>, %arg4: memref<8x8xi32, #tpu.memory_space<vmem>>, %arg5: memref<8x8xf32, #tpu.memory_space<vmem>>) attributes {dimension_semantics = [#tpu.dimension_semantics<parallel>], iteration_bounds = array<i64: 1>, scalar_prefetch = 0 : i64, scratch_operands = 0 : i64, tpu.core_type = #tpu.core_type<tc>, window_params = [{transform_indices = @transform_0, window_bounds = array<i64: 8, 8, 32>}, {pipeline_mode = #tpu.pipeline_mode<synchronous>, transform_indices = @transform_1, window_bounds = array<i64: 1, 32>}, {transform_indices = @transform_2, window_bounds = array<i64: 1, 1>}, {transform_indices = @transform_3, window_bounds = array<i64: 8, 8>}, {transform_indices = @transform_4, window_bounds = array<i64: 8, 8>}]} {
    %c0 = arith.constant 0 : index
    %c0_0 = arith.constant 0 : index
    %c0_1 = arith.constant 0 : index
    %0 = vector.load %arg1[%c0, %c0_0, %c0_1] : memref<8x8x32xf32, #tpu.memory_space<vmem>>, vector<8x8x32xf32>
    %c0_2 = arith.constant 0 : index
    %c0_3 = arith.constant 0 : index
    %1 = vector.load %arg2[%c0_2, %c0_3] : memref<1x32xf32, #tpu.memory_space<vmem>>, vector<1x32xf32>
    %c0_4 = arith.constant 0 : index
    %c0_5 = arith.constant 0 : index
    %2 = memref.load %arg3[%c0_4, %c0_5] : memref<1x1xf32, #tpu.memory_space<smem>>
    %3 = vector.shape_cast %1 : vector<1x32xf32> to vector<1x1x32xf32>
    %4 = vector.broadcast %3 : vector<1x1x32xf32> to vector<8x8x32xf32>
    %5 = arith.mulf %0, %4 : vector<8x8x32xf32>
    %cst = arith.constant dense<0.000000e+00> : vector<8x8xf32>
    %6 = vector.multi_reduction <add>, %5, %cst [2] : vector<8x8x32xf32> to vector<8x8xf32>
    %7 = vector.broadcast %2 : f32 to vector<8x8xf32>
    %8 = arith.addf %6, %7 : vector<8x8xf32>
    %c0_6 = arith.constant 0 : index
    %c0_7 = arith.constant 0 : index
    %9 = vector.load %arg4[%c0_6, %c0_7] : memref<8x8xi32, #tpu.memory_space<vmem>>, vector<8x8xi32>
    %c0_i32 = arith.constant 0 : i32
    %10 = vector.broadcast %c0_i32 : i32 to vector<8x8xi32>
    %11 = arith.cmpi ne, %9, %10 : vector<8x8xi32>
    %cst_8 = arith.constant 0xFF800000 : f32
    %12 = vector.broadcast %cst_8 : f32 to vector<8x8xf32>
    %13 = arith.select %11, %12, %8 : vector<8x8xi1>, vector<8x8xf32>
    %cst_9 = arith.constant dense<0xFF800000> : vector<8xf32>
    %14 = vector.multi_reduction <maximumf>, %13, %cst_9 [1] : vector<8x8xf32> to vector<8xf32>
    %15 = vector.shape_cast %14 : vector<8xf32> to vector<8x1xf32>
    %16 = vector.broadcast %15 : vector<8x1xf32> to vector<8x8xf32>
    %17 = arith.subf %13, %16 : vector<8x8xf32>
    %18 = math.exp %17 : vector<8x8xf32>
    %cst_10 = arith.constant dense<0.000000e+00> : vector<8xf32>
    %19 = vector.multi_reduction <add>, %18, %cst_10 [1] : vector<8x8xf32> to vector<8xf32>
    %20 = vector.shape_cast %19 : vector<8xf32> to vector<8x1xf32>
    %21 = vector.broadcast %20 : vector<8x1xf32> to vector<8x8xf32>
    %22 = arith.divf %18, %21 : vector<8x8xf32>
    %c0_11 = arith.constant 0 : index
    %c0_12 = arith.constant 0 : index
    %23 = vector.load %arg5[%c0_11, %c0_12] : memref<8x8xf32, #tpu.memory_space<vmem>>, vector<8x8xf32>
    tpu.vector_store %arg5[%c0_11, %c0_12], %22 {strides = array<i32>} : memref<8x8xf32, #tpu.memory_space<vmem>>, vector<8x8xf32>,
    return
  }
  func.func @transform_0(%arg0: i32) -> (i32, i32, i32) {
    %c0_i32 = arith.constant 0 : i32
    %c0_i32_0 = arith.constant 0 : i32
    %c0_i32_1 = arith.constant 0 : i32
    return %arg0, %c0_i32, %c0_i32_0 : i32, i32, i32
  }
  func.func @transform_1(%arg0: i32) -> (i32, i32) {
    %c0_i32 = arith.constant 0 : i32
    %c0_i32_0 = arith.constant 0 : i32
    %c0_i32_1 = arith.constant 0 : i32
    return %c0_i32, %c0_i32_0 : i32, i32
  }
  func.func @transform_2(%arg0: i32) -> (i32, i32) {
    %c0_i32 = arith.constant 0 : i32
    %c0_i32_0 = arith.constant 0 : i32
    %c0_i32_1 = arith.constant 0 : i32
    return %c0_i32, %c0_i32_0 : i32, i32
  }
  func.func @transform_3(%arg0: i32) -> (i32, i32) {
    %c0_i32 = arith.constant 0 : i32
    %c0_i32_0 = arith.constant 0 : i32
    return %arg0, %c0_i32 : i32, i32
  }
  func.func @transform_4(%arg0: i32) -> (i32, i32) {
    %c0_i32 = arith.constant 0 : i32
    %c0_i32_0 = arith.constant 0 : i32
    return %arg0, %c0_i32 : i32, i32
  }
}

</mosaic_0001>

<bundles_post_ra>
// kernel: tpu_custom_call.1
= control target key start
LH: loop header
LB: loop body
LE: loop exit
PB: predicated region body
PF: predicated region fallthrough
CT: control target
= control target key end

     0   :  { %10 = vsyncpa [#allocation4], 0  ;;  %s309_s0 = inlined_call_operand.hbm [shape: f32[8,8,32], index: 0, kind: input, shape index: {}]   ;;  %s310_s1 = inlined_call_operand.vmem [shape: f32[1,32], index: 1, kind: input, shape index: {}]   ;;  %s311_s2 = inlined_call_operand.<no memory space> [shape: f32[1,1], index: 2, kind: input, shape index: {}]   ;;  %s312_s3 = inlined_call_operand.vmem [shape: s32[8,8], index: 3, kind: input, shape index: {}]   ;;  %s313_s4 = inlined_call_operand.hbm [shape: f32[8,8], index: 4, kind: output, shape index: {}]  }
   0x1   :  { %11 = vsyncpa [#allocation5], 0  ;;  %s236_s15 = smov [#allocation3]   ;;  %s188_s19 = scalar_lea.hbm %s309_s0, 1024 }
   0x2   :  { %s17_s16 = sshll.u32 %s236_s15, 4  ;;  %p189_p0 = scmp.ne.s32.totalorder %s309_s0, %s188_s19  ;;  %s18_s16 = int_to_ptr.vmem [resolvable:$true] %s17_s16 }
   0x3   :  { %p192_p1 = scmp.lt.u32.totalorder %s188_s19, %s309_s0 }
   0x5   :  { %p194_p2 = pnand %p192_p1, %p189_p0 }
   0x7   :  { %197 = shalt.err (!%p194_p2)
}
   0x8   :  { %s198_s24 = scalar_lea.vmem %s18_s16, 1024  ;;  %p203_p4 = scmp.lt.s32.totalorder %s18_s16, %s18_s16 }
   0x9   :  { %p199_p3 = scmp.ne.s32.totalorder %s18_s16, %s198_s24  ;;  %p204_p5 = scmp.lt.s32.totalorder %s198_s24, %s198_s24 }
   0xb   :  { %p205_p6 = por %p204_p5, %p203_p4 }
   0xd   :  { %p206_p7 = pnand %p205_p6, %p199_p3 }
   0xf   :  { %209 = shalt.err (!%p206_p7)
}
  0x10   :  { %s237_s25 = smov 128   ;;  %s238_s26 = smov 8  }
  0x11   :  { %23 = dma.hbm_to_vmem [thread:$0]  %s309_s0, 1024, %s18_s16, [#allocation4], %s237_s25, %s237_s25, %s238_s26  }
  0x12   :  { %232 = dma.done.wait [#allocation4], 1024  }
  0x13   :  { %233 = vsyncadd [#allocation4], 4294966272  ;;  %v33_v0 = vld [vmem:[#allocation3] sm:$0xff]  ;;  %vm57_vm0 = vcmask 261120   ;;  %v35_v2 = vld [vmem:[#allocation3 + $0x10] sm:$0xff]  ;;  %v101_v25 = vlaneseq  ;;  %v82_v28 = vstv %s311_s2  ;;  %vm135_vm1 = vcmask 1041409  }
  0x14   :  { %v179_v1 = vld [vmem:[%s310_s1] ss:$0 sm:$0xff]  ;;  %v34_v5 = vld [vmem:[#allocation3 + $0x8] sm:$0xff]  ;;  %v36_v6 = vld [vmem:[#allocation3 + $0x18] sm:$0xff]  ;;  %vm137_vm2 = vcmask 1042434   ;;  %vm139_vm3 = vcmask 1043459  }
  0x15   :  { %v49_v3 = vmul.f32 %v179_v1, %v33_v0  ;;  %v51_v4 = vmul.f32 %v179_v1, %v35_v2  ;;  %v50_v7 = vmul.f32 %v179_v1, %v34_v5  ;;  %v52_v8 = vmul.f32 %v179_v1, %v36_v6  ;;  %v37_v9 = vld [vmem:[#allocation3 + $0x20] sm:$0xff]  ;;  %v38_v10 = vld [vmem:[#allocation3 + $0x28] sm:$0xff]  ;;  %v39_v17 = vld [vmem:[#allocation3 + $0x30] sm:$0xff] }
  0x16   :  { %v53_v15 = vmul.f32 %v179_v1, %v37_v9  ;;  %v54_v16 = vmul.f32 %v179_v1, %v38_v10  ;;  %v40_v18 = vld [vmem:[#allocation3 + $0x38] sm:$0xff]  ;;  %v55_v21 = vmul.f32 %v179_v1, %v39_v17  ;;  %v102_v26 = vand.u32 127, %v101_v25  ;;  %v91_v56 = vld [vmem:[%s312_s3] sm:$0xff]  ;;  %s239_s3 = smov [#allocation6]  }
  0x17   :  { %v58_v11 = vsel %vm57_vm0, %v49_v3, 0.0  ;;  %v64_v12 = vsel %vm57_vm0, %v51_v4, 0.0  ;;  %v61_v13 = vsel %vm57_vm0, %v50_v7, 0.0  ;;  %v67_v14 = vsel %vm57_vm0, %v52_v8, 0.0  ;;  %s170_s6 = sshll.u32 %s239_s3, 4  ;;  %s171_s6 = int_to_ptr.vmem [resolvable:$true] %s170_s6 }
  0x18   :  { %59 = vadd.xlane.f32.xlu0 %v58_v11  ;;  %65 = vadd.xlane.f32.xlu1 %v64_v12  ;;  %v70_v19 = vsel %vm57_vm0, %v53_v15, 0.0  ;;  %v73_v20 = vsel %vm57_vm0, %v54_v16, 0.0  ;;  %v56_v22 = vmul.f32 %v179_v1, %v40_v18  ;;  %v76_v23 = vsel %vm57_vm0, %v55_v21, 0.0  ;;  %s210_s7 = scalar_lea.vmem %s171_s6, 128  ;;  %p215_p9 = scmp.lt.s32.totalorder %s171_s6, %s171_s6 }
  0x19   :  { %v104_v27 = vshrl.u32 %v101_v25, 7  ;;  %vm141_vm4 = vcmask 1044484   ;;  %vm143_vm5 = vcmask 1045509   ;;  %vm145_vm6 = vcmask 1046534   ;;  %p211_p8 = scmp.ne.s32.totalorder %s171_s6, %s210_s7  ;;  %p216_p10 = scmp.lt.s32.totalorder %s210_s7, %s210_s7 }
  0x1a   :  { %v79_v24 = vsel %vm57_vm0, %v56_v22, 0.0  ;;  %vm147_vm7 = vcmask 1047559   ;;  %vm92_vm8 = vcmp.ne.s32.totalorder %v91_v56, 0  ;;  %vm151_vm9 = vcmask 64512  }
  0x1b   :  { %v105_v31 = vsub.s32 %v102_v26, %v104_v27  ;;  %p217_p11 = por %p216_p10, %p215_p9 }
  0x1c   :  { %62 = vadd.xlane.f32.xlu0 %v61_v13  ;;  %68 = vadd.xlane.f32.xlu1 %v67_v14 }
  0x1d   :  { %p218_p12 = pnand %p217_p11, %p211_p8 }
  0x20   :  { %71 = vadd.xlane.f32.xlu0 %v70_v19  ;;  %74 = vadd.xlane.f32.xlu1 %v73_v20 }
  0x24   :  { %77 = vadd.xlane.f32.xlu0 %v76_v23  ;;  %80 = vadd.xlane.f32.xlu1 %v79_v24 }
  0xa5   :  { %v60_v29 = vpop.xlane.xlu0 %59  ;;  %v66_v30 = vpop.xlane.xlu1 %65 }
  0xa6   :  { %v83_v32 = vadd.f32 %v82_v28, %v60_v29  ;;  %v85_v33 = vadd.f32 %v82_v28, %v66_v30 }
  0xa8   :  { %v106_v38 = vrot.slane %v83_v32, %v105_v31  ;;  %v114_v41 = vrot.slane %v85_v33, %v105_v31 }
  0xa9   :  { %v63_v34 = vpop.xlane.xlu0 %62  ;;  %v69_v35 = vpop.xlane.xlu1 %68 }
  0xaa   :  { %v84_v36 = vadd.f32 %v82_v28, %v63_v34  ;;  %v86_v37 = vadd.f32 %v82_v28, %v69_v35 }
  0xac   :  { %v110_v39 = vrot.slane %v84_v36, %v105_v31  ;;  %v118_v40 = vrot.slane %v86_v37, %v105_v31 }
  0xad   :  { %v72_v42 = vpop.xlane.xlu0 %71  ;;  %v75_v43 = vpop.xlane.xlu1 %74 }
  0xae   :  { %v136_v44 = vsel %vm135_vm1, %v110_v39, %v106_v38  ;;  %v87_v45 = vadd.f32 %v82_v28, %v72_v42  ;;  %v88_v46 = vadd.f32 %v82_v28, %v75_v43 }
  0xaf   :  { %v138_v47 = vsel %vm137_vm2, %v114_v41, %v136_v44 }
  0xb0   :  { %v140_v48 = vsel %vm139_vm3, %v118_v40, %v138_v47  ;;  %v122_v49 = vrot.slane %v87_v45, %v105_v31  ;;  %v126_v50 = vrot.slane %v88_v46, %v105_v31 }
  0xb1   :  { %v78_v51 = vpop.xlane.xlu0 %77  ;;  %v81_v52 = vpop.xlane.xlu1 %80 }
  0xb2   :  { %v142_v53 = vsel %vm141_vm4, %v122_v49, %v140_v48  ;;  %v89_v54 = vadd.f32 %v82_v28, %v78_v51  ;;  %v90_v55 = vadd.f32 %v82_v28, %v81_v52 }
  0xb3   :  { %v144_v59 = vsel %vm143_vm5, %v126_v50, %v142_v53 }
  0xb4   :  { %v130_v57 = vrot.slane %v89_v54, %v105_v31  ;;  %v134_v58 = vrot.slane %v90_v55, %v105_v31 }
  0xb6   :  { %v146_v60 = vsel %vm145_vm6, %v130_v57, %v144_v59 }
  0xb7   :  { %v148_v61 = vsel %vm147_vm7, %v134_v58, %v146_v60 }
  0xb8   :  { %v150_v62 = vsel %vm92_vm8, -inf, %v148_v61 }
  0xb9   :  { %v152_v63 = vsel %vm151_vm9, %v150_v62, -inf }
  0xba   :  { %153 = vmax.xlane.f32.xlu0 %v152_v63 }
 0x147   :  { %v154_v0 = vpop.xlane.xlu0 %153 }
 0x148   :  { %v155_v1 = vsub.f32 %v150_v62, %v154_v0 }
 0x14a   :  { %v156_v2 = vmul.f32 1.442695, %v155_v1 }
 0x14c   :  { %184 = vpow2.f32 %v156_v2 }
 0x156   :  { %v185_v3 = vpop.eup %184 }
 0x157   :  { %v158_v4 = vsel %vm151_vm9, %v185_v3, 0.0 }
 0x158   :  { %159 = vadd.xlane.f32.xlu1 %v158_v4 }
 0x1e5   :  { %v160_v5 = vpop.xlane.xlu1 %159 }
 0x1e6   :  { %186 = vrcp.f32 %v160_v5 }
 0x1f0   :  { %v187_v6 = vpop.eup %186 }
 0x1f1   :  { %v162_v7 = vmul.f32 %v187_v6, %v185_v3 }
 0x1f3   :  { %163 = vst.msk [vmem:[#allocation6] sm:$0xff] %vm151_vm9, %v162_v7 }
 0x1f4   :  { %221 = shalt.err (!%p218_p12)
}
 0x1f5   :  { %s222_s10 = scalar_lea.hbm %s313_s4, 128 }
 0x1f6   :  { %p223_p13 = scmp.ne.s32.totalorder %s313_s4, %s222_s10  ;;  %p226_p0 = scmp.lt.u32.totalorder %s222_s10, %s313_s4 }
 0x1f8   :  { %p228_p1 = pnand %p226_p0, %p223_p13 }
 0x1fa   :  { %231 = shalt.err (!%p228_p1)
}
 0x1fb   :  { %173 = dma.vmem_to_hbm [thread:$0]  %s171_s6, 128, %s313_s4, [#allocation5]  }
 0x1fc   :  { %234 = dma.done.wait [#allocation5], 128  }
 0x1fd   :  { %235 = vsyncadd [#allocation5], 4294967168 }
 0x1fe   :  { %177 = vsyncpa [#allocation4], 1 }
 0x1ff   :  { %178 = vsyncpa [#allocation5], 1 }

</bundles_post_ra>
